<compile_context>
chip_gen: v7x
topology: tpu7x:2x2x1
jax: 0.10.0
libtpu: 0.0.40
codegen_flags: <defaults>
</compile_context>

<pallas_src>
import functools
import math

import jax
import jax.numpy as jnp
from jax.experimental import pallas as pl
from jax.experimental.pallas import tpu as pltpu


# ---------------------------------------------------------------------------
# Sinusoidal table, identical to the PyTorch __init__ buffer (squeezed to
# [max_len, d_model], kept in float32).
# ---------------------------------------------------------------------------
def build_positional_encoding(max_len, d_model):
    position = jnp.arange(max_len, dtype=jnp.float32)[:, None]          # (L, 1)
    div_term = jnp.exp(jnp.arange(0, d_model, 2, dtype=jnp.float32)
                       * (-math.log(10000.0) / d_model))                # (D/2,)
    pe = jnp.zeros((max_len, d_model), jnp.float32)
    pe = pe.at[:, 0::2].set(jnp.sin(position * div_term))
    pe = pe.at[:, 1::2].set(jnp.cos(position * div_term))
    return pe


# ---------------------------------------------------------------------------
# Counter-based hash RNG (lowbias32).  Pure uint32 VPU ops -> lowers on TPU and
# in interpret mode.  Mask depends only on (seed, global position), so it is
# independent of the chosen tiling.
# ---------------------------------------------------------------------------
def _hash_u32(x):
    x = x ^ (x >> 16)
    x = x * jnp.uint32(0x7FEB352D)
    x = x ^ (x >> 15)
    x = x * jnp.uint32(0x846CA68B)
    x = x ^ (x >> 16)
    return x


# ---------------------------------------------------------------------------
# Kernels.  x/out block: (tS, tC) where tC is a multiple of D.  pe block:
# (tS, D) float32.  A single full-slab add and a single full-width store.
# ---------------------------------------------------------------------------
def _pe_add_kernel(x_ref, pe_ref, o_ref):
    rep = x_ref.shape[-1] // pe_ref.shape[-1]          # static
    pe_full = jnp.tile(pe_ref[...], (1, rep))          # (tS, tC) f32, built once
    y = x_ref[...].astype(jnp.float32) + pe_full       # add in f32 (PyTorch parity)
    o_ref[...] = y.astype(o_ref.dtype)                 # one lane-dense store


def _pe_add_dropout_kernel(seed_ref, x_ref, pe_ref, o_ref, *, dropout_p):
    rep = x_ref.shape[-1] // pe_ref.shape[-1]
    pe_full = jnp.tile(pe_ref[...], (1, rep))
    y = x_ref[...].astype(jnp.float32) + pe_full

    tS, tC = y.shape
    total_cols = pl.num_programs(1) * tC
    row0 = pl.program_id(0) * tS
    col0 = pl.program_id(1) * tC
    rows = jax.lax.broadcasted_iota(jnp.int32, (tS, tC), 0) + row0
    cols = jax.lax.broadcasted_iota(jnp.int32, (tS, tC), 1) + col0
    pos = (rows * total_cols + cols).astype(jnp.uint32)
    seed = seed_ref[0].astype(jnp.uint32) * jnp.uint32(0x9E3779B9)
    bits = _hash_u32(pos ^ seed)                        # one draw for the whole slab

    keep_prob = 1.0 - dropout_p
    thresh = jnp.uint32(min(int(keep_prob * 4294967296.0), 4294967295))
    y = jnp.where(bits < thresh, y * (1.0 / keep_prob), jnp.float32(0.0))
    o_ref[...] = y.astype(o_ref.dtype)                  # one lane-dense store


# ---------------------------------------------------------------------------
# Tiling choice.
# ---------------------------------------------------------------------------
def _choose_tiles(S, C, D, itemsize, target_bytes):
    """Pick (tS, tC): tC a multiple of lcm(D,128) dividing C (or full C),
    tS a multiple of the dtype's sublane packing, block ~= target_bytes."""
    sub = {4: 8, 2: 16, 1: 32}.get(itemsize, 8)

    # Column tile (only split when even an 8-row slab would exceed the target).
    tC = C
    if C * sub * itemsize > target_bytes:
        unit = D * 128 // math.gcd(D, 128)              # lcm(D, 128): pe map stays (i, 0)
        if 0 < unit < C and C % unit == 0:
            k = max(1, target_bytes // (unit * sub * itemsize))
            tC = min(C, unit * int(k))
            while C % tC:
                tC -= unit
            tC = max(unit, tC)

    # Row tile.
    if S <= sub:
        tS = S                                          # full-dim block is exempt
    else:
        rows = max(sub, (target_bytes // (tC * itemsize)) // sub * sub)
        tS = min((S // sub) * sub, rows)
        if S >= 4 * sub:                                # keep >= ~4 tiles for v7x's 2 TCs
            four_way = -(-S // 4)
            four_way = -(-four_way // sub) * sub
            tS = min(tS, four_way)
        tS = max(sub, tS)
    return tS, tC


# ---------------------------------------------------------------------------
# Wrapper: dropout(x + pe[:S]).  x: [S, B, D].
# ---------------------------------------------------------------------------
def positional_encoding_forward(x, pe_table, *, dropout_p=0.1, training=False,
                                seed=0, donate_x=False,
                                target_block_bytes=2 << 20):
    S, B, D = x.shape
    C = B * D
    x2 = x.reshape(S, C)                  # free contiguous view: seq x (B*D)
    pe2 = pe_table[:S]                    # (S, D) float32; add happens in f32 in-kernel

    itemsize = jnp.dtype(x.dtype).itemsize
    tS, tC = _choose_tiles(S, C, D, itemsize, target_block_bytes)
    grid = (pl.cdiv(S, tS), C // tC)

    vmem_limit = 48 * 1024 * 1024         # safe under v7x's 64 MiB physical VMEM
    resident = 4 * tS * tC * itemsize + 2 * tS * D * 4   # dbl-buffered in+out + pe
    assert resident <= vmem_limit, (resident, vmem_limit)

    out_shape = jax.ShapeDtypeStruct((S, C), x.dtype)
    compiler_params = pltpu.CompilerParams(
        dimension_semantics=("parallel", "parallel"),
        vmem_limit_bytes=vmem_limit)

    use_dropout = bool(training) and float(dropout_p) > 0.0

    if not use_dropout:
        out2 = pl.pallas_call(
            _pe_add_kernel,
            out_shape=out_shape,
            grid=grid,
            in_specs=[pl.BlockSpec((tS, tC), lambda i, j: (i, j)),
                      pl.BlockSpec((tS, D), lambda i, j: (i, 0))],
            out_specs=pl.BlockSpec((tS, tC), lambda i, j: (i, j)),
            compiler_params=compiler_params,
            input_output_aliases=({0: 0} if donate_x else {}),
        )(x2, pe2)
    else:
        assert 0.0 < float(dropout_p) < 1.0
        seed_arr = jnp.asarray([seed], dtype=jnp.int32)
        kernel = functools.partial(_pe_add_dropout_kernel,
                                   dropout_p=float(dropout_p))
        out2 = pl.pallas_call(
            kernel,
            out_shape=out_shape,
            grid_spec=pltpu.PrefetchScalarGridSpec(
                num_scalar_prefetch=1,          # seed lands in SMEM
                grid=grid,
                in_specs=[pl.BlockSpec((tS, tC), lambda i, j, s: (i, j)),
                          pl.BlockSpec((tS, D), lambda i, j, s: (i, 0))],
                out_specs=pl.BlockSpec((tS, tC), lambda i, j, s: (i, j)),
            ),
            compiler_params=compiler_params,
            # x2 is operand index 1 (seed is the scalar-prefetch operand 0).
            input_output_aliases=({1: 0} if donate_x else {}),
        )(seed_arr, x2, pe2)

    return out2.reshape(S, B, D)


if __name__ == "__main__":
    # --- 1) Small eval-mode check -------------------------------------------
    S, B, D = 8, 2, 32
    MAX_LEN = 64
    key = jax.random.PRNGKey(0)
    x = jax.random.normal(key, (S, B, D), dtype=jnp.float32)
    pe_table = build_positional_encoding(MAX_LEN, D)

    out = positional_encoding_forward(x, pe_table, dropout_p=0.1, training=False)
    out = jax.block_until_ready(out)
    ref = x + pe_table[:S][:, None, :]
    assert out.shape == (S, B, D)
    assert jnp.allclose(out, ref, atol=1e-6, rtol=1e-6)

    # --- 2) Multi-tile eval-mode check (grid = (4, 1)) ------------------------
    S2, B2, D2 = 64, 4, 128
    x_big = jax.random.normal(jax.random.PRNGKey(1), (S2, B2, D2), jnp.float32)
    pe_table2 = build_positional_encoding(128, D2)
    out_big = jax.block_until_ready(
        positional_encoding_forward(x_big, pe_table2, training=False))
    ref_big = x_big + pe_table2[:S2][:, None, :]
    assert jnp.allclose(out_big, ref_big, atol=1e-6, rtol=1e-6)

    # --- 3) Training-mode dropout check (hash RNG, tiling-invariant mask) ----
    p = 0.1
    out_tr = jax.block_until_ready(
        positional_encoding_forward(x_big, pe_table2, dropout_p=p,
                                    training=True, seed=123))
    assert out_tr.shape == (S2, B2, D2)
    kept = out_tr != 0.0
    scaled = ref_big * (1.0 / (1.0 - p))
    # Kept elements must equal the scaled reference (inverted dropout).
    assert bool(jnp.all(jnp.where(kept, jnp.abs(out_tr - scaled) < 1e-4, True)))
    # Drop rate should be ~p.
    drop_frac = float(1.0 - jnp.mean(kept.astype(jnp.float32)))
    assert 0.03 < drop_frac < 0.25, drop_frac
    # Different sequence regions must draw different dropout masks.
    kept2 = kept.reshape(S2, B2 * D2)
    assert not bool(jnp.all(kept2[:16] == kept2[16:32]))

    print("KERNEL_OK")
</pallas_src>

<mosaic_0001>
module attributes {stable_mosaic.version = 11 : i64} {
  func.func @_pe_add_kernel(%arg0: i32, %arg1: i32, %arg2: memref<8x64xf32, #tpu.memory_space<vmem>>, %arg3: memref<8x32xf32, #tpu.memory_space<vmem>>, %arg4: memref<8x64xf32, #tpu.memory_space<vmem>>) attributes {dimension_semantics = [#tpu.dimension_semantics<parallel>, #tpu.dimension_semantics<parallel>], iteration_bounds = array<i64: 1, 1>, scalar_prefetch = 0 : i64, scratch_operands = 0 : i64, tpu.core_type = #tpu.core_type<tc>, window_params = [{transform_indices = @transform_0, window_bounds = array<i64: 8, 64>}, {transform_indices = @transform_1, window_bounds = array<i64: 8, 32>}, {transform_indices = @transform_2, window_bounds = array<i64: 8, 64>}]} {
    %c0 = arith.constant 0 : index
    %c0_0 = arith.constant 0 : index
    %0 = vector.load %arg3[%c0, %c0_0] : memref<8x32xf32, #tpu.memory_space<vmem>>, vector<8x32xf32>
    %1 = tpu.concatenate %0, %0 in 1 : vector<8x32xf32>, vector<8x32xf32> -> vector<8x64xf32>
    %c0_1 = arith.constant 0 : index
    %c0_2 = arith.constant 0 : index
    %2 = vector.load %arg2[%c0_1, %c0_2] : memref<8x64xf32, #tpu.memory_space<vmem>>, vector<8x64xf32>
    %3 = arith.addf %2, %1 : vector<8x64xf32>
    %c0_3 = arith.constant 0 : index
    %c0_4 = arith.constant 0 : index
    %4 = vector.load %arg4[%c0_3, %c0_4] : memref<8x64xf32, #tpu.memory_space<vmem>>, vector<8x64xf32>
    tpu.vector_store %arg4[%c0_3, %c0_4], %3 {strides = array<i32>} : memref<8x64xf32, #tpu.memory_space<vmem>>, vector<8x64xf32>,
    return
  }
  func.func @transform_0(%arg0: i32, %arg1: i32) -> (i32, i32) {
    %c0_i32 = arith.constant 0 : i32
    return %arg0, %arg1 : i32, i32
  }
  func.func @transform_1(%arg0: i32, %arg1: i32) -> (i32, i32) {
    %c0_i32 = arith.constant 0 : i32
    %c0_i32_0 = arith.constant 0 : i32
    return %arg0, %c0_i32 : i32, i32
  }
  func.func @transform_2(%arg0: i32, %arg1: i32) -> (i32, i32) {
    %c0_i32 = arith.constant 0 : i32
    return %arg0, %arg1 : i32, i32
  }
}

</mosaic_0001>

<bundles_post_ra>
// kernel: tpu_custom_call.1
= control target key start
LH: loop header
LB: loop body
LE: loop exit
PB: predicated region body
PF: predicated region fallthrough
CT: control target
= control target key end

     0   :  { %7 = vsyncpa [#allocation3], 0  ;;  %s194_s0 = inlined_call_operand.hbm [shape: f32[8,64], index: 0, kind: input, shape index: {}]   ;;  %s195_s1 = inlined_call_operand.hbm [shape: f32[8,32], index: 1, kind: input, shape index: {}]   ;;  %s196_s2 = inlined_call_operand.hbm [shape: f32[8,64], index: 2, kind: output, shape index: {}]  }
   0x1   :  { %8 = vsyncpa [#allocation6], 0 }
   0x2   :  { %9 = vsyncpa [#allocation4], 0  ;;  %s139_s9 = smov [#allocation2]   ;;  %s140_s11 = smov [#allocation5]  }
   0x3   :  { %s16_s10 = sshll.u32 %s139_s9, 4  ;;  %s26_s12 = sshll.u32 %s140_s11, 4  ;;  %s17_s10 = int_to_ptr.vmem [resolvable:$true] %s16_s10  ;;  %s27_s12 = int_to_ptr.vmem [resolvable:$true] %s26_s12 }
   0x4   :  { %s67_s15 = scalar_lea.hbm %s194_s0, 128 }
   0x5   :  { %p68_p0 = scmp.ne.s32.totalorder %s194_s0, %s67_s15  ;;  %p71_p1 = scmp.lt.u32.totalorder %s67_s15, %s194_s0 }
   0x7   :  { %p73_p2 = pnand %p71_p1, %p68_p0 }
   0x9   :  { %76 = shalt.err (!%p73_p2)
}
   0xa   :  { %s77_s20 = scalar_lea.vmem %s17_s10, 128  ;;  %p82_p4 = scmp.lt.s32.totalorder %s17_s10, %s17_s10 }
   0xb   :  { %p78_p3 = scmp.ne.s32.totalorder %s17_s10, %s77_s20  ;;  %p83_p5 = scmp.lt.s32.totalorder %s77_s20, %s77_s20 }
   0xd   :  { %p84_p6 = por %p83_p5, %p82_p4 }
   0xf   :  { %p85_p7 = pnand %p84_p6, %p78_p3 }
  0x11   :  { %88 = shalt.err (!%p85_p7)
}
  0x12   :  { %19 = dma.hbm_to_vmem [thread:$0]  %s194_s0, 128, %s17_s10, [#allocation3]  }
  0x13   :  { %s89_s25 = scalar_lea.hbm %s195_s1, 128 }
  0x14   :  { %p90_p8 = scmp.ne.s32.totalorder %s195_s1, %s89_s25  ;;  %p93_p9 = scmp.lt.u32.totalorder %s89_s25, %s195_s1 }
  0x16   :  { %p95_p10 = pnand %p93_p9, %p90_p8 }
  0x18   :  { %98 = shalt.err (!%p95_p10)
}
  0x19   :  { %s99_s30 = scalar_lea.vmem %s27_s12, 128  ;;  %p104_p12 = scmp.lt.s32.totalorder %s27_s12, %s27_s12 }
  0x1a   :  { %p100_p11 = scmp.ne.s32.totalorder %s27_s12, %s99_s30  ;;  %p105_p13 = scmp.lt.s32.totalorder %s99_s30, %s99_s30 }
  0x1c   :  { %p106_p0 = por %p105_p13, %p104_p12 }
  0x1e   :  { %p107_p1 = pnand %p106_p0, %p100_p11 }
  0x20   :  { %110 = shalt.err (!%p107_p1)
}
  0x21   :  { %29 = dma.hbm_to_vmem [thread:$0]  %s195_s1, 128, %s27_s12, [#allocation6]  }
  0x22   :  { %133 = dma.done.wait [#allocation3], 128  }
  0x23   :  { %134 = vsyncadd [#allocation3], 4294967168 }
  0x24   :  { %135 = dma.done.wait [#allocation6], 128  }
  0x25   :  { %136 = vsyncadd [#allocation6], 4294967168  ;;  %v36_v0 = vld [vmem:[#allocation5] sm:$0xff]  ;;  %s141_s4 = smov 32   ;;  %vm41_vm0 = vcmask 261120   ;;  %v43_v1 = vld [vmem:[#allocation2] sm:$0xff] }
  0x26   :  { %38 = vrot.lane.b32.xlu0 %v36_v0, %s141_s4  ;;  %s142_s5 = smov [#allocation7]   ;;  %vm45_vm1 = vcmask 523264  }
  0x27   :  { %s53_s6 = sshll.u32 %s142_s5, 4  ;;  %s54_s6 = int_to_ptr.vmem [resolvable:$true] %s53_s6 }
  0x28   :  { %s111_s7 = scalar_lea.vmem %s54_s6, 128  ;;  %p116_p3 = scmp.lt.s32.totalorder %s54_s6, %s54_s6 }
  0x29   :  { %p112_p2 = scmp.ne.s32.totalorder %s54_s6, %s111_s7  ;;  %p117_p4 = scmp.lt.s32.totalorder %s111_s7, %s111_s7 }
  0x2b   :  { %p118_p5 = por %p117_p4, %p116_p3 }
  0x2d   :  { %p119_p6 = pnand %p118_p5, %p112_p2 }
  0x98   :  { %v39_v2 = vpop.permute.xlu0 %38 }
  0x99   :  { %v42_v3 = vsel %vm41_vm0, %v36_v0, %v39_v2 }
  0x9a   :  { %v44_v4 = vadd.f32 %v43_v1, %v42_v3 }
  0x9c   :  { %46 = vst.msk [vmem:[#allocation7] sm:$0xff] %vm45_vm1, %v44_v4 }
  0x9d   :  { %122 = shalt.err (!%p119_p6)
}
  0x9e   :  { %s123_s9 = scalar_lea.hbm %s196_s2, 128 }
  0x9f   :  { %p124_p7 = scmp.ne.s32.totalorder %s196_s2, %s123_s9  ;;  %p127_p8 = scmp.lt.u32.totalorder %s123_s9, %s196_s2 }
  0xa1   :  { %p129_p9 = pnand %p127_p8, %p124_p7 }
  0xa3   :  { %132 = shalt.err (!%p129_p9)
}
  0xa4   :  { %56 = dma.vmem_to_hbm [thread:$0]  %s54_s6, 128, %s196_s2, [#allocation4]  }
  0xa5   :  { %137 = dma.done.wait [#allocation4], 128  }
  0xa6   :  { %138 = vsyncadd [#allocation4], 4294967168 }
  0xa7   :  { %60 = vsyncpa [#allocation3], 1 }
  0xa8   :  { %61 = vsyncpa [#allocation6], 1 }
  0xa9   :  { %62 = vsyncpa [#allocation4], 1 }

</bundles_post_ra>
